<compile_context>
chip_gen: v7x
topology: tpu7x:2x2x1
jax: 0.10.0
libtpu: 0.0.40
codegen_flags: <defaults>
</compile_context>

<pallas_src>
import functools
import numpy as np

import jax
import jax.numpy as jnp
from jax.experimental import pallas as pl
from jax.experimental.pallas import tpu as pltpu

# ----------------------- config (small synthetic Swin) -----------------------
IN_CHANS = 3
IMG = 32
PATCH = 4
EMBED_DIM = 32
DEPTHS = (2, 2)
HEADS = (2, 4)
WS = 4          # window size
MLP_RATIO = 2

_VMEM_LIMIT = 32 * 1024 * 1024   # conservative: within v7x's 64 MiB physical VMEM


def _choose_tile(m, max_tile=512):
    """Largest row tile <= max_tile that divides m (multiple of 8), else m."""
    if m <= max_tile:
        return m
    for t in range(max_tile, 7, -8):
        if m % t == 0:
            return t
    return m


# ------------------------------ Pallas kernels -------------------------------


def _fused_linear_kernel(*refs, pre_ln, post_ln, activation, residual, eps):
    o_ref = refs[-1]
    idx = 0
    x = refs[idx][...].astype(jnp.float32); idx += 1
    if pre_ln:
        g = refs[idx][...]; b = refs[idx + 1][...]; idx += 2
        mu = jnp.mean(x, axis=-1, keepdims=True)
        xc = x - mu
        var = jnp.mean(xc * xc, axis=-1, keepdims=True)
        x = xc * jax.lax.rsqrt(var + eps) * g + b
    w = refs[idx][...]; bias = refs[idx + 1][...]; idx += 2
    # bf16 MXU operands, f32 accumulation.
    y = jnp.dot(x.astype(w.dtype), w, preferred_element_type=jnp.float32) + bias
    if activation == "gelu":
        # TODO(synk): torch nn.GELU uses exact erf; tanh approximation used here
        # because erf has no guaranteed Mosaic EUP lowering.
        y = jax.nn.gelu(y, approximate=True)
    if post_ln:
        g2 = refs[idx][...]; b2 = refs[idx + 1][...]; idx += 2
        mu = jnp.mean(y, axis=-1, keepdims=True)
        yc = y - mu
        var = jnp.mean(yc * yc, axis=-1, keepdims=True)
        y = yc * jax.lax.rsqrt(var + eps) * g2 + b2
    if residual:
        y = y + refs[idx][...].astype(jnp.float32); idx += 1
    o_ref[...] = y.astype(o_ref.dtype)


def fused_linear(x, w, b, *, pre_norm=None, post_norm=None, residual=None,
                 activation=None, eps=1e-5, max_tile=512):
    """[pre-LN] -> x @ w + b -> [GELU] -> [post-LN] -> [+ residual], M-tiled."""
    M, K = x.shape
    Kw, N = w.shape
    assert K == Kw
    TM = _choose_tile(M, max_tile)
    grid = (M // TM,)

    inputs = [x]
    in_specs = [pl.BlockSpec((TM, K), lambda i: (i, 0))]
    if pre_norm is not None:
        g, bb = pre_norm
        inputs += [g.reshape(1, K).astype(jnp.float32),
                   bb.reshape(1, K).astype(jnp.float32)]
        in_specs += [pl.BlockSpec((1, K), lambda i: (0, 0)),
                     pl.BlockSpec((1, K), lambda i: (0, 0))]
    inputs += [w, b.reshape(1, N).astype(jnp.float32)]
    in_specs += [pl.BlockSpec((K, N), lambda i: (0, 0)),
                 pl.BlockSpec((1, N), lambda i: (0, 0))]
    if post_norm is not None:
        g2, bb2 = post_norm
        inputs += [g2.reshape(1, N).astype(jnp.float32),
                   bb2.reshape(1, N).astype(jnp.float32)]
        in_specs += [pl.BlockSpec((1, N), lambda i: (0, 0)),
                     pl.BlockSpec((1, N), lambda i: (0, 0))]
    if residual is not None:
        inputs += [residual]
        in_specs += [pl.BlockSpec((TM, N), lambda i: (i, 0))]

    kernel = functools.partial(
        _fused_linear_kernel, pre_ln=pre_norm is not None,
        post_ln=post_norm is not None, activation=activation,
        residual=residual is not None, eps=eps)

    return pl.pallas_call(
        kernel,
        out_shape=jax.ShapeDtypeStruct((M, N), x.dtype),
        grid=grid,
        in_specs=in_specs,
        out_specs=pl.BlockSpec((TM, N), lambda i: (i, 0)),
        compiler_params=pltpu.CompilerParams(
            dimension_semantics=("parallel",),
            vmem_limit_bytes=_VMEM_LIMIT),
    )(*inputs)


def _window_attn_kernel(xw_ref, qkv_ref, bias_ref, pw_ref, pb_ref, o_ref, *,
                        num_heads, scale):
    qkv = qkv_ref[...].astype(jnp.float32)        # (nW, Wa, 3C)
    C = qkv.shape[-1] // 3
    Dh = C // num_heads
    bias = bias_ref[...]                          # (nW, H, Wa, Wa), f32
    pw = pw_ref[...]                              # (C, C), bf16

    # residual + proj bias folded into the accumulator
    acc = xw_ref[...].astype(jnp.float32) + pb_ref[...]
    for h in range(num_heads):
        q = (qkv[:, :, h * Dh:(h + 1) * Dh] * scale).astype(jnp.bfloat16)
        k = qkv[:, :, C + h * Dh:C + (h + 1) * Dh].astype(jnp.bfloat16)
        v = qkv[:, :, 2 * C + h * Dh:2 * C + (h + 1) * Dh].astype(jnp.bfloat16)
        s = jnp.einsum('wqd,wkd->wqk', q, k, preferred_element_type=jnp.float32)
        s = s + bias[:, h]
        s = s - jnp.max(s, axis=-1, keepdims=True)
        p = jnp.exp(s)
        p = p * pl.reciprocal(jnp.sum(p, axis=-1, keepdims=True), approx=True)
        o_h = jnp.einsum('wqk,wkd->wqd', p.astype(jnp.bfloat16), v,
                         preferred_element_type=jnp.float32)
        # fused output projection: accumulate o_h @ proj_w[hDh:(h+1)Dh, :]
        acc = acc + jnp.einsum('wqd,dc->wqc', o_h.astype(pw.dtype),
                               pw[h * Dh:(h + 1) * Dh, :],
                               preferred_element_type=jnp.float32)
    o_ref[...] = acc.astype(o_ref.dtype)


def window_attention(xw, qkv, attn_bias, proj_w, proj_b, *, num_heads, scale, nW):
    """Per grid step: all nW windows of one image; out = xw + proj(attn) + proj_b."""
    BnW, Wa, C = xw.shape
    B = BnW // nW
    H = num_heads
    kernel = functools.partial(_window_attn_kernel, num_heads=num_heads,
                               scale=scale)
    return pl.pallas_call(
        kernel,
        out_shape=jax.ShapeDtypeStruct((BnW, Wa, C), xw.dtype),
        grid=(B,),
        in_specs=[pl.BlockSpec((nW, Wa, C), lambda b: (b, 0, 0)),
                  pl.BlockSpec((nW, Wa, 3 * C), lambda b: (b, 0, 0)),
                  pl.BlockSpec((nW, H, Wa, Wa), lambda b: (0, 0, 0, 0)),
                  pl.BlockSpec((C, C), lambda b: (0, 0)),
                  pl.BlockSpec((1, C), lambda b: (0, 0))],
        out_specs=pl.BlockSpec((nW, Wa, C), lambda b: (b, 0, 0)),
        compiler_params=pltpu.CompilerParams(
            dimension_semantics=("parallel",),
            vmem_limit_bytes=_VMEM_LIMIT),
    )(xw, qkv, attn_bias, proj_w, proj_b.reshape(1, C).astype(jnp.float32))


# ----------------------------- plain-JAX glue ---------------------------------


def window_partition(x, ws):
    B, H, W, C = x.shape
    x = x.reshape(B, H // ws, ws, W // ws, ws, C)
    return x.transpose(0, 1, 3, 2, 4, 5).reshape(-1, ws, ws, C)


def window_reverse(wins, ws, B, H, W):
    C = wins.shape[-1]
    x = wins.reshape(B, H // ws, W // ws, ws, ws, C)
    return x.transpose(0, 1, 3, 2, 4, 5).reshape(B, H, W, C)


def relative_position_index(ws):
    coords = np.stack(np.meshgrid(np.arange(ws), np.arange(ws), indexing='ij'))
    cf = coords.reshape(2, -1)
    rel = cf[:, :, None] - cf[:, None, :]
    rel = rel.transpose(1, 2, 0).astype(np.int32)
    rel[:, :, 0] += ws - 1
    rel[:, :, 1] += ws - 1
    rel[:, :, 0] *= 2 * ws - 1
    return rel.sum(-1)  # (Wa, Wa)


def build_attn_mask(H, W, ws, shift):
    img_mask = np.zeros((1, H, W, 1), np.float32)
    cnt = 0
    for h in (slice(0, -ws), slice(-ws, -shift), slice(-shift, None)):
        for w in (slice(0, -ws), slice(-ws, -shift), slice(-shift, None)):
            img_mask[:, h, w, :] = cnt
            cnt += 1
    mw = img_mask.reshape(1, H // ws, ws, W // ws, ws, 1)
    mw = mw.transpose(0, 1, 3, 2, 4, 5).reshape(-1, ws * ws)
    am = mw[:, None, :] - mw[:, :, None]
    am = np.where(am != 0, -100.0, 0.0).astype(np.float32)
    return jnp.asarray(am)  # (nW, Wa, Wa)


def patch_embed(x_nchw, p):
    B, Cin, H, W = x_nchw.shape
    gh, gw = H // PATCH, W // PATCH
    x = x_nchw.reshape(B, Cin, gh, PATCH, gw, PATCH)
    x = x.transpose(0, 2, 4, 1, 3, 5).reshape(B * gh * gw, Cin * PATCH * PATCH)
    # stride==kernel conv == matmul; post-LN fused into the same kernel.
    x = fused_linear(x, p['w'], p['b'], post_norm=(p['norm_g'], p['norm_b']))
    return x, gh, gw                               # (B*gh*gw, EMBED_DIM)


def swin_block(x, blk, B, Hg, Wg, num_heads):
    # x: (B*L, C)
    C = x.shape[-1]
    ws = blk['window_size']
    shift = blk['shift']
    nW = blk['num_windows']
    Wa = ws * ws
    Dh = C // num_heads

    # ---- attention branch, computed in window layout so LN / residual fuse ----
    xs = x.reshape(B, Hg, Wg, C)
    if shift > 0:
        xs = jnp.roll(xs, shift=(-shift, -shift), axis=(1, 2))
    xw = window_partition(xs, ws).reshape(B * nW * Wa, C)   # row permutation of x

    # norm1 fused into the qkv matmul
    qkv = fused_linear(xw, blk['qkv_w'], blk['qkv_b'],
                       pre_norm=(blk['norm1_g'], blk['norm1_b']))
    # attention + proj + proj_b + residual(xw), all inside one kernel
    yw = window_attention(xw.reshape(B * nW, Wa, C),
                          qkv.reshape(B * nW, Wa, 3 * C),
                          blk['attn_bias'], blk['proj_w'], blk['proj_b'],
                          num_heads=num_heads, scale=Dh ** -0.5, nW=nW)
    xo = window_reverse(yw.reshape(B * nW, ws, ws, C), ws, B, Hg, Wg)
    if shift > 0:
        xo = jnp.roll(xo, shift=(shift, shift), axis=(1, 2))
    x = xo.reshape(B * Hg * Wg, C)        # == shortcut + attention output

    # ---- MLP branch: norm2+fc1+GELU fused, residual fused into fc2 ----
    h = fused_linear(x, blk['fc1_w'], blk['fc1_b'],
                     pre_norm=(blk['norm2_g'], blk['norm2_b']),
                     activation='gelu')
    x = fused_linear(h, blk['fc2_w'], blk['fc2_b'], residual=x)
    return x


def patch_merging(x, p, B, Hg, Wg):
    C = x.shape[-1]
    xs = x.reshape(B, Hg, Wg, C)
    x0 = xs[:, 0::2, 0::2, :]
    x1 = xs[:, 1::2, 0::2, :]
    x2 = xs[:, 0::2, 1::2, :]
    x3 = xs[:, 1::2, 1::2, :]
    xm = jnp.concatenate([x0, x1, x2, x3], axis=-1)
    xm = xm.reshape(B * (Hg // 2) * (Wg // 2), 4 * C)
    # norm fused into the (bias-free) reduction matmul
    xm = fused_linear(xm, p['red_w'], jnp.zeros((2 * C,), jnp.float32),
                      pre_norm=(p['norm_g'], p['norm_b']))
    return xm                                      # (B * L/4, 2C)


def swin_backbone_forward(params, x_nchw):
    """features_only-style forward: returns list of NCHW feature maps."""
    B = x_nchw.shape[0]
    x, Hg, Wg = patch_embed(x_nchw, params['patch_embed'])   # (B*L, C)
    features = []
    for stage in params['stages']:
        for blk in stage['blocks']:
            x = swin_block(x, blk, B, Hg, Wg, stage['num_heads'])
        C = x.shape[-1]
        features.append(x.reshape(B, Hg, Wg, C).transpose(0, 3, 1, 2))  # NCHW
        if stage['downsample'] is not None:
            x = patch_merging(x, stage['downsample'], B, Hg, Wg)
            Hg, Wg = Hg // 2, Wg // 2
    return features


# ------------------------------ parameter init --------------------------------
# TODO(synk): original module loads pretrained timm weights; here all params are
# deterministic synthetic initializations.


def init_params(key):
    keys = iter(jax.random.split(key, 256))
    WDT = jnp.bfloat16   # matmul operand dtype (MXU-native); accumulation is f32

    def nrm(shape, std=0.02, dtype=jnp.float32):
        return (std * jax.random.normal(next(keys), shape,
                                        dtype=jnp.float32)).astype(dtype)

    pd = PATCH * PATCH * IN_CHANS
    params = {
        'patch_embed': dict(
            w=nrm((pd, EMBED_DIM), dtype=WDT),
            b=jnp.zeros((EMBED_DIM,), jnp.float32),
            norm_g=jnp.ones((EMBED_DIM,), jnp.float32),
            norm_b=jnp.zeros((EMBED_DIM,), jnp.float32),
        )
    }

    Hg = Wg = IMG // PATCH
    dim = EMBED_DIM
    stages = []
    for s in range(len(DEPTHS)):
        heads = HEADS[s]
        ws = min(WS, Hg, Wg)
        Wa = ws * ws
        nW = (Hg // ws) * (Wg // ws)
        rel_idx = jnp.asarray(relative_position_index(ws), jnp.int32)
        blocks = []
        for d in range(DEPTHS[s]):
            shift = 0 if (d % 2 == 0 or ws >= min(Hg, Wg)) else ws // 2
            rel_table = nrm(((2 * ws - 1) ** 2, heads))
            # Precompute gathered rel-pos bias (+ shift mask) once at init:
            # (nW, heads, Wa, Wa), resident in the attention kernel.
            bias = rel_table[rel_idx]                       # (Wa, Wa, heads)
            bias = jnp.transpose(bias, (2, 0, 1))           # (heads, Wa, Wa)
            bias = jnp.broadcast_to(bias[None], (nW, heads, Wa, Wa))
            if shift > 0:
                mask = build_attn_mask(Hg, Wg, ws, shift)   # (nW, Wa, Wa)
                bias = bias + mask[:, None, :, :]
            blocks.append(dict(
                norm1_g=jnp.ones((dim,), jnp.float32),
                norm1_b=jnp.zeros((dim,), jnp.float32),
                qkv_w=nrm((dim, 3 * dim), dtype=WDT),
                qkv_b=jnp.zeros((3 * dim,), jnp.float32),
                attn_bias=jnp.asarray(bias, jnp.float32),
                proj_w=nrm((dim, dim), dtype=WDT),
                proj_b=jnp.zeros((dim,), jnp.float32),
                norm2_g=jnp.ones((dim,), jnp.float32),
                norm2_b=jnp.zeros((dim,), jnp.float32),
                fc1_w=nrm((dim, MLP_RATIO * dim), dtype=WDT),
                fc1_b=jnp.zeros((MLP_RATIO * dim,), jnp.float32),
                fc2_w=nrm((MLP_RATIO * dim, dim), dtype=WDT),
                fc2_b=jnp.zeros((dim,), jnp.float32),
                shift=shift,
                window_size=ws,
                num_windows=nW,
            ))
        stage = dict(blocks=blocks, num_heads=heads)
        if s < len(DEPTHS) - 1:
            stage['downsample'] = dict(
                norm_g=jnp.ones((4 * dim,), jnp.float32),
                norm_b=jnp.zeros((4 * dim,), jnp.float32),
                red_w=nrm((4 * dim, 2 * dim), dtype=WDT),
            )
            dim *= 2
            Hg, Wg = Hg // 2, Wg // 2
        else:
            stage['downsample'] = None
        stages.append(stage)
    params['stages'] = stages
    return params


# ------------------------------------ main ------------------------------------

if __name__ == "__main__":
    key = jax.random.PRNGKey(0)
    pkey, xkey = jax.random.split(key)
    params = init_params(pkey)

    x = jax.random.normal(xkey, (2, IN_CHANS, IMG, IMG), dtype=jnp.float32)  # NCHW
    feats = swin_backbone_forward(params, x)
    feats = jax.block_until_ready(feats)

    assert feats[0].shape == (2, EMBED_DIM, IMG // PATCH, IMG // PATCH)
    assert feats[1].shape == (2, 2 * EMBED_DIM, IMG // PATCH // 2, IMG // PATCH // 2)
    assert all(bool(jnp.all(jnp.isfinite(f))) for f in feats)
    print("KERNEL_OK")
</pallas_src>

<mosaic_0001>
module attributes {stable_mosaic.version = 11 : i64} {
  func.func @_fused_linear_kernel(%arg0: i32, %arg1: memref<128x48xf32, #tpu.memory_space<vmem>>, %arg2: memref<48x32xbf16, #tpu.memory_space<vmem>>, %arg3: memref<1x32xf32, #tpu.memory_space<vmem>>, %arg4: memref<1x32xf32, #tpu.memory_space<vmem>>, %arg5: memref<1x32xf32, #tpu.memory_space<vmem>>, %arg6: memref<128x32xf32, #tpu.memory_space<vmem>>) attributes {dimension_semantics = [#tpu.dimension_semantics<parallel>], iteration_bounds = array<i64: 1>, scalar_prefetch = 0 : i64, scratch_operands = 0 : i64, tpu.core_type = #tpu.core_type<tc>, window_params = [{transform_indices = @transform_0, window_bounds = array<i64: 128, 48>}, {pipeline_mode = #tpu.pipeline_mode<synchronous>, transform_indices = @transform_1, window_bounds = array<i64: 48, 32>}, {pipeline_mode = #tpu.pipeline_mode<synchronous>, transform_indices = @transform_2, window_bounds = array<i64: 1, 32>}, {pipeline_mode = #tpu.pipeline_mode<synchronous>, transform_indices = @transform_3, window_bounds = array<i64: 1, 32>}, {pipeline_mode = #tpu.pipeline_mode<synchronous>, transform_indices = @transform_4, window_bounds = array<i64: 1, 32>}, {transform_indices = @transform_5, window_bounds = array<i64: 128, 32>}]} {
    %c0 = arith.constant 0 : index
    %c0_0 = arith.constant 0 : index
    %0 = vector.load %arg1[%c0, %c0_0] : memref<128x48xf32, #tpu.memory_space<vmem>>, vector<128x48xf32>
    %c0_1 = arith.constant 0 : index
    %c0_2 = arith.constant 0 : index
    %1 = vector.load %arg2[%c0_1, %c0_2] : memref<48x32xbf16, #tpu.memory_space<vmem>>, vector<48x32xbf16>
    %c0_3 = arith.constant 0 : index
    %c0_4 = arith.constant 0 : index
    %2 = vector.load %arg3[%c0_3, %c0_4] : memref<1x32xf32, #tpu.memory_space<vmem>>, vector<1x32xf32>
    %3 = arith.truncf %0 : vector<128x48xf32> to vector<128x48xbf16>
    %cst = arith.constant dense<0.000000e+00> : vector<128x32xf32>
    %4 = tpu.matmul %3, %1, %cst {dimension_numbers = #tpu.dot_dimension_numbers<[1], [0], [0], [1], [0, 0, 1, 1], [], []>} : vector<128x48xbf16>, vector<48x32xbf16>, vector<128x32xf32> -> vector<128x32xf32>
    %5 = vector.broadcast %2 : vector<1x32xf32> to vector<128x32xf32>
    %6 = arith.addf %4, %5 : vector<128x32xf32>
    %c0_5 = arith.constant 0 : index
    %c0_6 = arith.constant 0 : index
    %7 = vector.load %arg4[%c0_5, %c0_6] : memref<1x32xf32, #tpu.memory_space<vmem>>, vector<1x32xf32>
    %c0_7 = arith.constant 0 : index
    %c0_8 = arith.constant 0 : index
    %8 = vector.load %arg5[%c0_7, %c0_8] : memref<1x32xf32, #tpu.memory_space<vmem>>, vector<1x32xf32>
    %cst_9 = arith.constant dense<0.000000e+00> : vector<128xf32>
    %9 = vector.multi_reduction <add>, %6, %cst_9 [1] : vector<128x32xf32> to vector<128xf32>
    %10 = vector.shape_cast %9 : vector<128xf32> to vector<128x1xf32>
    %cst_10 = arith.constant 3.200000e+01 : f32
    %11 = vector.broadcast %cst_10 : f32 to vector<128x1xf32>
    %12 = arith.divf %10, %11 : vector<128x1xf32>
    %13 = vector.broadcast %12 : vector<128x1xf32> to vector<128x32xf32>
    %14 = arith.subf %6, %13 : vector<128x32xf32>
    %15 = arith.mulf %14, %14 : vector<128x32xf32>
    %cst_11 = arith.constant dense<0.000000e+00> : vector<128xf32>
    %16 = vector.multi_reduction <add>, %15, %cst_11 [1] : vector<128x32xf32> to vector<128xf32>
    %17 = vector.shape_cast %16 : vector<128xf32> to vector<128x1xf32>
    %cst_12 = arith.constant 3.200000e+01 : f32
    %18 = vector.broadcast %cst_12 : f32 to vector<128x1xf32>
    %19 = arith.divf %17, %18 : vector<128x1xf32>
    %cst_13 = arith.constant 9.99999974E-6 : f32
    %20 = vector.broadcast %cst_13 : f32 to vector<128x1xf32>
    %21 = arith.addf %19, %20 : vector<128x1xf32>
    %22 = math.rsqrt %21 : vector<128x1xf32>
    %23 = vector.broadcast %22 : vector<128x1xf32> to vector<128x32xf32>
    %24 = arith.mulf %14, %23 : vector<128x32xf32>
    %25 = vector.broadcast %7 : vector<1x32xf32> to vector<128x32xf32>
    %26 = arith.mulf %24, %25 : vector<128x32xf32>
    %27 = vector.broadcast %8 : vector<1x32xf32> to vector<128x32xf32>
    %28 = arith.addf %26, %27 : vector<128x32xf32>
    %c0_14 = arith.constant 0 : index
    %c0_15 = arith.constant 0 : index
    %29 = vector.load %arg6[%c0_14, %c0_15] : memref<128x32xf32, #tpu.memory_space<vmem>>, vector<128x32xf32>
    tpu.vector_store %arg6[%c0_14, %c0_15], %28 {strides = array<i32>} : memref<128x32xf32, #tpu.memory_space<vmem>>, vector<128x32xf32>,
    return
  }
  func.func @transform_0(%arg0: i32) -> (i32, i32) {
    %c0_i32 = arith.constant 0 : i32
    %c0_i32_0 = arith.constant 0 : i32
    return %arg0, %c0_i32 : i32, i32
  }
  func.func @transform_1(%arg0: i32) -> (i32, i32) {
    %c0_i32 = arith.constant 0 : i32
    %c0_i32_0 = arith.constant 0 : i32
    %c0_i32_1 = arith.constant 0 : i32
    return %c0_i32, %c0_i32_0 : i32, i32
  }
  func.func @transform_2(%arg0: i32) -> (i32, i32) {
    %c0_i32 = arith.constant 0 : i32
    %c0_i32_0 = arith.constant 0 : i32
    %c0_i32_1 = arith.constant 0 : i32
    return %c0_i32, %c0_i32_0 : i32, i32
  }
  func.func @transform_3(%arg0: i32) -> (i32, i32) {
    %c0_i32 = arith.constant 0 : i32
    %c0_i32_0 = arith.constant 0 : i32
    %c0_i32_1 = arith.constant 0 : i32
    return %c0_i32, %c0_i32_0 : i32, i32
  }
  func.func @transform_4(%arg0: i32) -> (i32, i32) {
    %c0_i32 = arith.constant 0 : i32
    %c0_i32_0 = arith.constant 0 : i32
    %c0_i32_1 = arith.constant 0 : i32
    return %c0_i32, %c0_i32_0 : i32, i32
  }
  func.func @transform_5(%arg0: i32) -> (i32, i32) {
    %c0_i32 = arith.constant 0 : i32
    %c0_i32_0 = arith.constant 0 : i32
    return %arg0, %c0_i32 : i32, i32
  }
}

</mosaic_0001>

<bundles_post_ra>
// kernel: tpu_custom_call.1
= control target key start
LH: loop header
LB: loop body
LE: loop exit
PB: predicated region body
PF: predicated region fallthrough
CT: control target
= control target key end

     0   :  { %vm76_vm0 = vcmask 392192   ;;  %vm200_vm1 = vcmask 261120   ;;  %s942_s1 = inlined_call_operand.vmem [shape: bf16[48,32], index: 1, kind: input, shape index: {}]   ;;  %s943_s0 = inlined_call_operand.vmem [shape: f32[128,48], index: 0, kind: input, shape index: {}]   ;;  %s944_s2 = inlined_call_operand.vmem [shape: f32[1,32], index: 2, kind: input, shape index: {}]   ;;  %s945_s3 = inlined_call_operand.vmem [shape: f32[1,32], index: 3, kind: input, shape index: {}]   ;;  %s946_s4 = inlined_call_operand.vmem [shape: f32[1,32], index: 4, kind: input, shape index: {}]   ;;  %s947_s5 = inlined_call_operand.vmem [shape: f32[128,32], index: 5, kind: output, shape index: {}]  }
   0x1   :  { %v527_v0 = vld [vmem:[%s942_s1] sm:$0xff]   ;;  %v528_v1 = vld [vmem:[%s942_s1 + $0x8] sm:$0xff]   ;;  %v529_v5 = vld [vmem:[%s942_s1 + $0x10] sm:$0xff]  }
   0x2   :  { %499 = vmatprep.subr.bf16.mxu0 %v527_v0  ;;  %521 = vmatprep.subr.bf16.mxu1 %v527_v0  ;;  %v21_v2 = vld [vmem:[%s943_s0] sm:$0xff]  ;;  %v22_v3 = vld [vmem:[%s943_s0 + $0x8] sm:$0xff]  ;;  %v23_v9 = vld [vmem:[%s943_s0 + $0x10] sm:$0xff] }
   0x3   :  { %500 = vmatpush3.bf16.msra.mxu0 %v527_v0  ;;  %524 = vmatpush3.bf16.msra.mxu1 %v527_v0  ;;  %v29_v4 = vld [vmem:[%s943_s0 + $0x40] sm:$0xff]  ;;  %v44_v6 = vpack.c.bf16 %v22_v3, %v21_v2  ;;  %v30_v7 = vld [vmem:[%s943_s0 + $0x48] sm:$0xff]  ;;  %v24_v10 = vld [vmem:[%s943_s0 + $0x18] sm:$0xff] }
   0x4   :  { %501 = vmatprep.subr.bf16.mxu0 %v528_v1  ;;  %522 = vmatprep.subr.bf16.mxu1 %v528_v1  ;;  %v48_v8 = vpack.c.bf16 %v30_v7, %v29_v4  ;;  %v31_v11 = vld [vmem:[%s943_s0 + $0x50] sm:$0xff]  ;;  %v32_v12 = vld [vmem:[%s943_s0 + $0x58] sm:$0xff]  ;;  %v25_v13 = vld [vmem:[%s943_s0 + $0x20] sm:$0xff]  ;;  %v45_v17 = vpack.c.bf16 %v24_v10, %v23_v9 }
   0x5   :  { %505 = vmatprep.mubr.msk.bf16.mxu0 %vm76_vm0, %v44_v6  ;;  %v26_v14 = vld [vmem:[%s943_s0 + $0x28] sm:$0xff]  ;;  %v33_v15 = vld [vmem:[%s943_s0 + $0x60] sm:$0xff]  ;;  %v49_v18 = vpack.c.bf16 %v32_v12, %v31_v11  ;;  %v27_v21 = vld [vmem:[%s943_s0 + $0x30] sm:$0xff] }
   0x6   :  { %v34_v16 = vld [vmem:[%s943_s0 + $0x68] sm:$0xff]  ;;  %513 = vmatprep.mubr.msk.bf16.mxu1 %vm76_vm0, %v48_v8  ;;  %v46_v19 = vpack.c.bf16 %v26_v14, %v25_v13  ;;  %v28_v22 = vld [vmem:[%s943_s0 + $0x38] sm:$0xff]  ;;  %v35_v23 = vld [vmem:[%s943_s0 + $0x70] sm:$0xff] }
   0x7   :  { %502 = vmatpush3.bf16.msra.mxu0 %v528_v1  ;;  %525 = vmatpush3.bf16.msra.mxu1 %v528_v1  ;;  %v50_v20 = vpack.c.bf16 %v34_v16, %v33_v15  ;;  %v36_v24 = vld [vmem:[%s943_s0 + $0x78] sm:$0xff]  ;;  %v47_v25 = vpack.c.bf16 %v28_v22, %v27_v21  ;;  %v474_v27 = vld [vmem:[%s944_s2] ss:$0 sm:$0xff] }
   0x8   :  { %503 = vmatprep.subr.bf16.mxu0 %v529_v5  ;;  %523 = vmatprep.subr.bf16.mxu1 %v529_v5  ;;  %v51_v26 = vpack.c.bf16 %v36_v24, %v35_v23 }
   0xb   :  { %504 = vmatpush3.bf16.msra.mxu0 %v529_v5  ;;  %526 = vmatpush3.bf16.msra.mxu1 %v529_v5 }
   0xe   :  { %506 = vmatmul.mubr.msk.bf16.vlgmr.msra.gmra.mrb[0].mxu0 %vm76_vm0, %v45_v17  ;;  %514 = vmatmul.mubr.msk.bf16.vlgmr.msra.gmra.mrb[0].mxu1 %vm76_vm0, %v49_v18 }
   0xf   :  { %509 = vmatprep.mubr.msk.bf16.mxu0 %vm76_vm0, %v46_v19  ;;  %517 = vmatprep.mubr.msk.bf16.mxu1 %vm76_vm0, %v50_v20 }
  0x16   :  { %510 = vmatmul.mubr.msk.bf16.gmra.mrb[4].mxu0 %vm76_vm0, %v47_v25  ;;  %518 = vmatmul.mubr.msk.bf16.gmra.mrb[4].mxu1 %vm76_vm0, %v51_v26 }
  0xe1   :  { %v507_v28 = vpop.f32.mrb[0].mxu0  ;;  %v515_v29 = vpop.f32.mrb[0].mxu1 }
  0xe2   :  { %v660_v30 = vadd.f32 %v507_v28, %v474_v27  ;;  %v662_v31 = vadd.f32 %v515_v29, %v474_v27  ;;  %v135_v32 = vpop.f32.mrb[1].mxu0  ;;  %v167_v33 = vpop.f32.mrb[1].mxu1 }
  0xe3   :  { %v508_v34 = vpop.f32.mrb[2].mxu0  ;;  %v516_v35 = vpop.f32.mrb[2].mxu1  ;;  %v664_v36 = vadd.f32 %v474_v27, %v135_v32  ;;  %v672_v42 = vadd.f32 %v474_v27, %v167_v33 }
  0xe4   :  { %v666_v37 = vadd.f32 %v508_v34, %v474_v27  ;;  %v138_v38 = vpop.f32.mrb[3].mxu0  ;;  %v170_v39 = vpop.f32.mrb[3].mxu1  ;;  %v231_v40 = vsel %vm200_vm1, %v662_v31, 0.0  ;;  %v207_v41 = vsel %vm200_vm1, %v660_v30, 0.0  ;;  %v674_v43 = vadd.f32 %v516_v35, %v474_v27 }
  0xe5   :  { %232 = vadd.xlane.f32.xlu0 %v231_v40  ;;  %208 = vadd.xlane.f32.xlu1 %v207_v41  ;;  %v201_v45 = vsel %vm200_vm1, %v664_v36, 0.0  ;;  %v680_v52 = vadd.f32 %v474_v27, %v138_v38  ;;  %v682_v53 = vadd.f32 %v474_v27, %v170_v39  ;;  %v225_v55 = vsel %vm200_vm1, %v672_v42, 0.0 }
  0xe6   :  { %v210_v44 = vsel %vm200_vm1, %v666_v37, 0.0  ;;  %v234_v54 = vsel %vm200_vm1, %v674_v43, 0.0 }
  0xe7   :  { %v228_v60 = vsel %vm200_vm1, %v682_v53, 0.0  ;;  %v204_v61 = vsel %vm200_vm1, %v680_v52, 0.0 }
  0xe9   :  { %211 = vadd.xlane.f32.xlu1 %v210_v44  ;;  %202 = vadd.xlane.f32.xlu0 %v201_v45  ;;  %v511_v46 = vpop.f32.mrb[4].mxu0  ;;  %v519_v47 = vpop.f32.mrb[4].mxu1 }
  0xea   :  { %v151_v48 = vpop.f32.mrb[5].mxu0  ;;  %v183_v49 = vpop.f32.mrb[5].mxu1  ;;  %v688_v58 = vadd.f32 %v511_v46, %v474_v27  ;;  %v716_v8 = vadd.f32 %v519_v47, %v474_v27 }
  0xeb   :  { %v512_v50 = vpop.f32.mrb[6].mxu0  ;;  %v520_v51 = vpop.f32.mrb[6].mxu1  ;;  %v700_v0 = vadd.f32 %v474_v27, %v151_v48  ;;  %v704_v2 = vadd.f32 %v474_v27, %v183_v49 }
  0xec   :  { %v154_v56 = vpop.f32.mrb[7].mxu0  ;;  %v186_v57 = vpop.f32.mrb[7].mxu1  ;;  %v690_v59 = vadd.f32 %v512_v50, %v474_v27  ;;  %v219_v63 = vsel %vm200_vm1, %v688_v58, 0.0  ;;  %v718_v9 = vadd.f32 %v520_v51, %v474_v27  ;;  %v243_v11 = vsel %vm200_vm1, %v716_v8, 0.0 }
  0xed   :  { %235 = vadd.xlane.f32.xlu1 %v234_v54  ;;  %226 = vadd.xlane.f32.xlu0 %v225_v55  ;;  %v702_v1 = vadd.f32 %v474_v27, %v154_v56  ;;  %v706_v3 = vadd.f32 %v474_v27, %v186_v57  ;;  %v213_v5 = vsel %vm200_vm1, %v700_v0, 0.0  ;;  %v237_v7 = vsel %vm200_vm1, %v704_v2, 0.0 }
  0xee   :  { %v222_v62 = vsel %vm200_vm1, %v690_v59, 0.0  ;;  %v246_v10 = vsel %vm200_vm1, %v718_v9, 0.0 }
  0xef   :  { %v216_v4 = vsel %vm200_vm1, %v702_v1, 0.0  ;;  %v240_v6 = vsel %vm200_vm1, %v706_v3, 0.0 }
  0xf1   :  { %229 = vadd.xlane.f32.xlu1 %v228_v60  ;;  %205 = vadd.xlane.f32.xlu0 %v204_v61 }
  0xf5   :  { %223 = vadd.xlane.f32.xlu1 %v222_v62  ;;  %220 = vadd.xlane.f32.xlu0 %v219_v63 }
  0xf9   :  { %217 = vadd.xlane.f32.xlu1 %v216_v4  ;;  %214 = vadd.xlane.f32.xlu0 %v213_v5 }
  0xfd   :  { %241 = vadd.xlane.f32.xlu1 %v240_v6  ;;  %238 = vadd.xlane.f32.xlu0 %v237_v7 }
 0x101   :  { %247 = vadd.xlane.f32.xlu1 %v246_v10  ;;  %244 = vadd.xlane.f32.xlu0 %v243_v11 }
 0x172   :  { %v233_v12 = vpop.xlane.xlu0 %232  ;;  %v209_v13 = vpop.xlane.xlu1 %208 }
 0x173   :  { %v260_v14 = vmul.f32 0.03125, %v233_v12  ;;  %v252_v15 = vmul.f32 0.03125, %v209_v13 }
 0x175   :  { %v725_v16 = vsub.f32 %v662_v31, %v260_v14  ;;  %v728_v17 = vsub.f32 %v660_v30, %v252_v15 }
 0x176   :  { %v212_v18 = vpop.xlane.xlu1 %211  ;;  %v203_v19 = vpop.xlane.xlu0 %202 }
 0x177   :  { %v253_v20 = vmul.f32 0.03125, %v212_v18  ;;  %v250_v21 = vmul.f32 0.03125, %v203_v19  ;;  %v284_v22 = vmul.f32 %v728_v17, %v728_v17  ;;  %v292_v26 = vmul.f32 %v725_v16, %v725_v16 }
 0x179   :  { %v733_v23 = vsub.f32 %v666_v37, %v253_v20  ;;  %v736_v24 = vsub.f32 %v664_v36, %v250_v21  ;;  %v304_v25 = vsel %vm200_vm1, %v284_v22, 0.0  ;;  %v328_v36 = vsel %vm200_vm1, %v292_v26, 0.0 }
 0x17a   :  { %v236_v27 = vpop.xlane.xlu1 %235  ;;  %305 = vadd.xlane.f32.xlu0 %v304_v25  ;;  %v227_v28 = vpop.xlane.xlu0 %226 }
 0x17b   :  { %v261_v29 = vmul.f32 0.03125, %v236_v27  ;;  %v258_v30 = vmul.f32 0.03125, %v227_v28  ;;  %v285_v31 = vmul.f32 %v733_v23, %v733_v23  ;;  %v282_v32 = vmul.f32 %v736_v24, %v736_v24 }
 0x17d   :  { %v746_v33 = vsub.f32 %v674_v43, %v261_v29  ;;  %v749_v34 = vsub.f32 %v672_v42, %v258_v30  ;;  %v307_v35 = vsel %vm200_vm1, %v285_v31, 0.0  ;;  %v298_v44 = vsel %vm200_vm1, %v282_v32, 0.0 }
 0x17e   :  { %v230_v37 = vpop.xlane.xlu1 %229  ;;  %308 = vadd.xlane.f32.xlu1 %v307_v35  ;;  %329 = vadd.xlane.f32.xlu0 %v328_v36  ;;  %v206_v38 = vpop.xlane.xlu0 %205 }
 0x17f   :  { %v259_v39 = vmul.f32 0.03125, %v230_v37  ;;  %v251_v40 = vmul.f32 0.03125, %v206_v38  ;;  %v293_v41 = vmul.f32 %v746_v33, %v746_v33  ;;  %v290_v46 = vmul.f32 %v749_v34, %v749_v34 }
 0x181   :  { %v757_v43 = vsub.f32 %v682_v53, %v259_v39  ;;  %v760_v42 = vsub.f32 %v680_v52, %v251_v40  ;;  %v331_v45 = vsel %vm200_vm1, %v293_v41, 0.0  ;;  %v322_v55 = vsel %vm200_vm1, %v290_v46, 0.0 }
 0x182   :  { %v224_v47 = vpop.xlane.xlu1 %223  ;;  %332 = vadd.xlane.f32.xlu1 %v331_v45  ;;  %299 = vadd.xlane.f32.xlu0 %v298_v44  ;;  %v221_v48 = vpop.xlane.xlu0 %220 }
 0x183   :  { %v257_v49 = vmul.f32 0.03125, %v224_v47  ;;  %v256_v50 = vmul.f32 0.03125, %v221_v48  ;;  %v283_v51 = vmul.f32 %v760_v42, %v760_v42  ;;  %v291_v53 = vmul.f32 %v757_v43, %v757_v43 }
 0x185   :  { %v770_v52 = vsub.f32 %v690_v59, %v257_v49  ;;  %v773_v54 = vsub.f32 %v688_v58, %v256_v50  ;;  %v301_v56 = vsel %vm200_vm1, %v283_v51, 0.0  ;;  %v325_v4 = vsel %vm200_vm1, %v291_v53, 0.0 }
 0x186   :  { %v218_v57 = vpop.xlane.xlu1 %217  ;;  %323 = vadd.xlane.f32.xlu0 %v322_v55  ;;  %302 = vadd.xlane.f32.xlu1 %v301_v56  ;;  %v215_v60 = vpop.xlane.xlu0 %214 }
 0x187   :  { %v255_v61 = vmul.f32 0.03125, %v218_v57  ;;  %v254_v62 = vmul.f32 0.03125, %v215_v60  ;;  %v288_v63 = vmul.f32 %v773_v54, %v773_v54  ;;  %v289_v6 = vmul.f32 %v770_v52, %v770_v52  ;;  %v823_v60 = vld [vmem:[%s945_s3] ss:$0 sm:$0xff] }
 0x189   :  { %v781_v59 = vsub.f32 %v702_v1, %v255_v61  ;;  %v784_v58 = vsub.f32 %v700_v0, %v254_v62  ;;  %v316_v5 = vsel %vm200_vm1, %v288_v63, 0.0  ;;  %v319_v15 = vsel %vm200_vm1, %v289_v6, 0.0  ;;  %v829_v6 = vld [vmem:[%s946_s4] ss:$0 sm:$0xff] }
 0x18a   :  { %v242_v7 = vpop.xlane.xlu1 %241  ;;  %326 = vadd.xlane.f32.xlu1 %v325_v4  ;;  %317 = vadd.xlane.f32.xlu0 %v316_v5  ;;  %v239_v10 = vpop.xlane.xlu0 %238 }
 0x18b   :  { %v263_v11 = vmul.f32 0.03125, %v242_v7  ;;  %v262_v12 = vmul.f32 0.03125, %v239_v10  ;;  %v286_v13 = vmul.f32 %v784_v58, %v784_v58  ;;  %v287_v1 = vmul.f32 %v781_v59, %v781_v59 }
 0x18d   :  { %v794_v0 = vsub.f32 %v706_v3, %v263_v11  ;;  %v797_v14 = vsub.f32 %v704_v2, %v262_v12  ;;  %v310_v18 = vsel %vm200_vm1, %v286_v13, 0.0  ;;  %v313_v26 = vsel %vm200_vm1, %v287_v1, 0.0 }
 0x18e   :  { %v248_v19 = vpop.xlane.xlu1 %247  ;;  %320 = vadd.xlane.f32.xlu1 %v319_v15  ;;  %311 = vadd.xlane.f32.xlu0 %v310_v18  ;;  %v245_v20 = vpop.xlane.xlu0 %244 }
 0x18f   :  { %v265_v21 = vmul.f32 0.03125, %v248_v19  ;;  %v264_v22 = vmul.f32 0.03125, %v245_v20  ;;  %v294_v25 = vmul.f32 %v797_v14, %v797_v14  ;;  %v295_v28 = vmul.f32 %v794_v0, %v794_v0 }
 0x191   :  { %v805_v3 = vsub.f32 %v718_v9, %v265_v21  ;;  %v808_v2 = vsub.f32 %v716_v8, %v264_v22  ;;  %v334_v27 = vsel %vm200_vm1, %v294_v25, 0.0  ;;  %v337_v30 = vsel %vm200_vm1, %v295_v28, 0.0 }
 0x192   :  { %314 = vadd.xlane.f32.xlu1 %v313_v26  ;;  %335 = vadd.xlane.f32.xlu0 %v334_v27 }
 0x193   :  { %v296_v29 = vmul.f32 %v808_v2, %v808_v2  ;;  %v297_v9 = vmul.f32 %v805_v3, %v805_v3 }
 0x195   :  { %v340_v31 = vsel %vm200_vm1, %v296_v29, 0.0  ;;  %v343_v8 = vsel %vm200_vm1, %v297_v9, 0.0 }
 0x196   :  { %338 = vadd.xlane.f32.xlu1 %v337_v30  ;;  %341 = vadd.xlane.f32.xlu0 %v340_v31 }
 0x19a   :  { %344 = vadd.xlane.f32.xlu1 %v343_v8 }
 0x207   :  { %v306_v32 = vpop.xlane.xlu0 %305 }
 0x208   :  { %v348_v35 = vmul.f32 0.03125, %v306_v32 }
 0x20a   :  { %v364_v36 = vadd.f32 1e-05, %v348_v35 }
 0x20b   :  { %v309_v37 = vpop.xlane.xlu1 %308  ;;  %v330_v38 = vpop.xlane.xlu0 %329 }
 0x20c   :  { %530 = vrsqrt.f32 %v364_v36  ;;  %v349_v39 = vmul.f32 0.03125, %v309_v37  ;;  %v356_v40 = vmul.f32 0.03125, %v330_v38 }
 0x20e   :  { %v365_v41 = vadd.f32 1e-05, %v349_v39  ;;  %v372_v44 = vadd.f32 1e-05, %v356_v40 }
 0x20f   :  { %v333_v45 = vpop.xlane.xlu1 %332  ;;  %v300_v46 = vpop.xlane.xlu0 %299 }
 0x210   :  { %532 = vrsqrt.f32 %v365_v41  ;;  %v357_v47 = vmul.f32 0.03125, %v333_v45  ;;  %v346_v48 = vmul.f32 0.03125, %v300_v46 }
 0x211   :  { %534 = vrsqrt.f32 %v372_v44 }
 0x212   :  { %v373_v49 = vadd.f32 1e-05, %v357_v47  ;;  %v362_v50 = vadd.f32 1e-05, %v346_v48 }
 0x213   :  { %v303_v51 = vpop.xlane.xlu1 %302  ;;  %v324_v53 = vpop.xlane.xlu0 %323 }
 0x214   :  { %536 = vrsqrt.f32 %v373_v49  ;;  %v347_v55 = vmul.f32 0.03125, %v303_v51  ;;  %v354_v56 = vmul.f32 0.03125, %v324_v53 }
 0x215   :  { %538 = vrsqrt.f32 %v362_v50 }
 0x216   :  { %v531_v57 = vpop.eup %530  ;;  %v363_v61 = vadd.f32 1e-05, %v347_v55  ;;  %v370_v62 = vadd.f32 1e-05, %v354_v56 }
 0x217   :  { %v396_v63 = vmul.f32 %v531_v57, %v728_v17  ;;  %v327_v4 = vpop.xlane.xlu1 %326  ;;  %v318_v5 = vpop.xlane.xlu0 %317 }
 0x218   :  { %540 = vrsqrt.f32 %v363_v61  ;;  %v355_v7 = vmul.f32 0.03125, %v327_v4  ;;  %v352_v10 = vmul.f32 0.03125, %v318_v5 }
 0x219   :  { %v418_v11 = vmul.f32 %v823_v60, %v396_v63  ;;  %542 = vrsqrt.f32 %v370_v62 }
 0x21a   :  { %v533_v12 = vpop.eup %532  ;;  %v371_v13 = vadd.f32 1e-05, %v355_v7  ;;  %v368_v1 = vadd.f32 1e-05, %v352_v10 }
 0x21b   :  { %v535_v15 = vpop.eup %534  ;;  %v440_v18 = vadd.f32 %v829_v6, %v418_v11  ;;  %v397_v17 = vmul.f32 %v533_v12, %v733_v23  ;;  %v321_v19 = vpop.xlane.xlu1 %320 }
 0x21c   :  { %v312_v20 = vpop.xlane.xlu0 %311  ;;  %v404_v21 = vmul.f32 %v535_v15, %v725_v16  ;;  %544 = vrsqrt.f32 %v371_v13  ;;  %v353_v22 = vmul.f32 0.03125, %v321_v19 }
 0x21d   :  { %v350_v25 = vmul.f32 0.03125, %v312_v20  ;;  %456 = vst.msk [vmem:[%s947_s5 + $0x10] sm:$0xff] %vm200_vm1, %v440_v18  ;;  %v419_v26 = vmul.f32 %v823_v60, %v397_v17  ;;  %546 = vrsqrt.f32 %v368_v1 }
 0x21e   :  { %v537_v27 = vpop.eup %536  ;;  %v426_v28 = vmul.f32 %v823_v60, %v404_v21  ;;  %v369_v29 = vadd.f32 1e-05, %v353_v22 }
 0x21f   :  { %v366_v23 = vadd.f32 1e-05, %v350_v25  ;;  %v539_v30 = vpop.eup %538  ;;  %v441_v31 = vadd.f32 %v829_v6, %v419_v26  ;;  %v405_v16 = vmul.f32 %v537_v27, %v746_v33  ;;  %v315_v9 = vpop.xlane.xlu1 %314 }
 0x220   :  { %v336_v8 = vpop.xlane.xlu0 %335  ;;  %v448_v32 = vadd.f32 %v829_v6, %v426_v28  ;;  %v394_v35 = vmul.f32 %v539_v30, %v736_v24  ;;  %548 = vrsqrt.f32 %v369_v29  ;;  %v351_v36 = vmul.f32 0.03125, %v315_v9 }
 0x221   :  { %457 = vst.msk [vmem:[%s947_s5 + $0x18] sm:$0xff] %vm200_vm1, %v441_v31  ;;  %v427_v37 = vmul.f32 %v823_v60, %v405_v16  ;;  %550 = vrsqrt.f32 %v366_v23  ;;  %v358_v38 = vmul.f32 0.03125, %v336_v8 }
 0x222   :  { %v541_v39 = vpop.eup %540  ;;  %464 = vst.msk [vmem:[%s947_s5 + $0x50] sm:$0xff] %vm200_vm1, %v448_v32  ;;  %v416_v33 = vmul.f32 %v823_v60, %v394_v35  ;;  %v367_v24 = vadd.f32 1e-05, %v351_v36 }
 0x223   :  { %v543_v40 = vpop.eup %542  ;;  %v449_v41 = vadd.f32 %v829_v6, %v427_v37  ;;  %v395_v44 = vmul.f32 %v541_v39, %v760_v42  ;;  %v374_v45 = vadd.f32 1e-05, %v358_v38  ;;  %v339_v46 = vpop.xlane.xlu1 %338 }
 0x224   :  { %v342_v47 = vpop.xlane.xlu0 %341  ;;  %v438_v48 = vadd.f32 %v829_v6, %v416_v33  ;;  %v402_v49 = vmul.f32 %v543_v40, %v749_v34  ;;  %552 = vrsqrt.f32 %v367_v24  ;;  %v359_v50 = vmul.f32 0.03125, %v339_v46 }
 0x225   :  { %465 = vst.msk [vmem:[%s947_s5 + $0x58] sm:$0xff] %vm200_vm1, %v449_v41  ;;  %v417_v51 = vmul.f32 %v823_v60, %v395_v44  ;;  %554 = vrsqrt.f32 %v374_v45  ;;  %v360_v53 = vmul.f32 0.03125, %v342_v47 }
 0x226   :  { %v545_v55 = vpop.eup %544  ;;  %454 = vst.msk [vmem:[%s947_s5] sm:$0xff] %vm200_vm1, %v438_v48  ;;  %v424_v42 = vmul.f32 %v823_v60, %v402_v49  ;;  %v375_v34 = vadd.f32 1e-05, %v359_v50 }
 0x227   :  { %v547_v56 = vpop.eup %546  ;;  %v439_v57 = vadd.f32 %v829_v6, %v417_v51  ;;  %v403_v61 = vmul.f32 %v545_v55, %v757_v43  ;;  %v376_v62 = vadd.f32 1e-05, %v360_v53  ;;  %v345_v63 = vpop.xlane.xlu1 %344 }
 0x228   :  { %v446_v4 = vadd.f32 %v829_v6, %v424_v42  ;;  %v400_v5 = vmul.f32 %v547_v56, %v773_v54  ;;  %556 = vrsqrt.f32 %v375_v34  ;;  %v361_v7 = vmul.f32 0.03125, %v345_v63 }
 0x229   :  { %455 = vst.msk [vmem:[%s947_s5 + $0x8] sm:$0xff] %vm200_vm1, %v439_v57  ;;  %v425_v10 = vmul.f32 %v823_v60, %v403_v61  ;;  %558 = vrsqrt.f32 %v376_v62 }
 0x22a   :  { %v549_v11 = vpop.eup %548  ;;  %462 = vst.msk [vmem:[%s947_s5 + $0x40] sm:$0xff] %vm200_vm1, %v446_v4  ;;  %v422_v43 = vmul.f32 %v823_v60, %v400_v5  ;;  %v377_v12 = vadd.f32 1e-05, %v361_v7 }
 0x22b   :  { %v551_v54 = vpop.eup %550  ;;  %v447_v13 = vadd.f32 %v829_v6, %v425_v10  ;;  %v401_v1 = vmul.f32 %v549_v11, %v770_v52 }
 0x22c   :  { %v444_v15 = vadd.f32 %v829_v6, %v422_v43  ;;  %v398_v18 = vmul.f32 %v551_v54, %v784_v58  ;;  %560 = vrsqrt.f32 %v377_v12 }
 0x22d   :  { %463 = vst.msk [vmem:[%s947_s5 + $0x48] sm:$0xff] %vm200_vm1, %v447_v13  ;;  %v423_v17 = vmul.f32 %v823_v60, %v401_v1 }
 0x22e   :  { %v553_v19 = vpop.eup %552  ;;  %460 = vst.msk [vmem:[%s947_s5 + $0x30] sm:$0xff] %vm200_vm1, %v444_v15  ;;  %v420_v52 = vmul.f32 %v823_v60, %v398_v18 }
 0x22f   :  { %v555_v20 = vpop.eup %554  ;;  %v445_v21 = vadd.f32 %v829_v6, %v423_v17  ;;  %v399_v58 = vmul.f32 %v553_v19, %v781_v59 }
 0x230   :  { %v442_v22 = vadd.f32 %v829_v6, %v420_v52  ;;  %v406_v25 = vmul.f32 %v555_v20, %v797_v14 }
 0x231   :  { %461 = vst.msk [vmem:[%s947_s5 + $0x38] sm:$0xff] %vm200_vm1, %v445_v21  ;;  %v421_v26 = vmul.f32 %v823_v60, %v399_v58 }
 0x232   :  { %v557_v27 = vpop.eup %556  ;;  %458 = vst.msk [vmem:[%s947_s5 + $0x20] sm:$0xff] %vm200_vm1, %v442_v22  ;;  %v428_v28 = vmul.f32 %v823_v60, %v406_v25 }
 0x233   :  { %v559_v59 = vpop.eup %558  ;;  %v443_v29 = vadd.f32 %v829_v6, %v421_v26  ;;  %v407_v14 = vmul.f32 %v557_v27, %v794_v0 }
 0x234   :  { %v450_v23 = vadd.f32 %v829_v6, %v428_v28  ;;  %v408_v30 = vmul.f32 %v559_v59, %v808_v2 }
 0x235   :  { %459 = vst.msk [vmem:[%s947_s5 + $0x28] sm:$0xff] %vm200_vm1, %v443_v29  ;;  %v429_v31 = vmul.f32 %v823_v60, %v407_v14 }
 0x236   :  { %v561_v16 = vpop.eup %560  ;;  %466 = vst.msk [vmem:[%s947_s5 + $0x60] sm:$0xff] %vm200_vm1, %v450_v23  ;;  %v430_v9 = vmul.f32 %v823_v60, %v408_v30 }
 0x237   :  { %v451_v0 = vadd.f32 %v829_v6, %v429_v31  ;;  %v409_v8 = vmul.f32 %v561_v16, %v805_v3 }
 0x238   :  { %v452_v2 = vadd.f32 %v829_v6, %v430_v9 }
 0x239   :  { %467 = vst.msk [vmem:[%s947_s5 + $0x68] sm:$0xff] %vm200_vm1, %v451_v0  ;;  %v431_v32 = vmul.f32 %v823_v60, %v409_v8 }
 0x23a   :  { %468 = vst.msk [vmem:[%s947_s5 + $0x70] sm:$0xff] %vm200_vm1, %v452_v2 }
 0x23b   :  { %v453_v35 = vadd.f32 %v829_v6, %v431_v32 }
 0x23d   :  { %469 = vst.msk [vmem:[%s947_s5 + $0x78] sm:$0xff] %vm200_vm1, %v453_v35 }

</bundles_post_ra>
